<compile_context>
chip_gen: v7x
topology: tpu7x:2x2x1
jax: 0.10.0
libtpu: 0.0.40
codegen_flags: <defaults>
</compile_context>

<pallas_src>
import functools

import jax
import jax.numpy as jnp
from jax.experimental import pallas as pl
from jax.experimental.pallas import tpu as pltpu


def _critic_kernel(sa_ref, w1_ref, b1_ref, w2s_ref, w2a_ref, b2_ref,
                   w3_ref, b3_ref, w4r_ref, b4_ref, out_ref, *, leak: float):
    sa = sa_ref[...]                                          # (TB, S+A) bf16

    # --- fc1 (BN pre-folded) + leaky_relu.  Trailing A rows of w1 are zero,
    #     so the action lanes of `sa` contribute nothing here.
    h1 = jnp.dot(sa, w1_ref[...], preferred_element_type=jnp.float32) + b1_ref[...]
    h1 = jnp.where(h1 > 0, h1, leak * h1)

    # --- fc2 over cat(h1, action), expressed as two matmuls.  Leading S rows
    #     of w2a are zero, so the state lanes of `sa` contribute nothing here.
    h2 = (jnp.dot(h1.astype(jnp.bfloat16), w2s_ref[...],
                  preferred_element_type=jnp.float32)
          + jnp.dot(sa, w2a_ref[...], preferred_element_type=jnp.float32)
          + b2_ref[...])
    h2 = jnp.where(h2 > 0, h2, leak * h2)

    # --- fc3 + leaky_relu ---
    h3 = (jnp.dot(h2.astype(jnp.bfloat16), w3_ref[...],
                  preferred_element_type=jnp.float32) + b3_ref[...])
    h3 = jnp.where(h3 > 0, h3, leak * h3)

    # --- fc4 as a transposed matvec: (1,H3) . (TB,H3)^T -> lane-dense (1,TB).
    q = jax.lax.dot_general(w4r_ref[...], h3.astype(jnp.bfloat16),
                            dimension_numbers=(((1,), (1,)), ((), ())),
                            preferred_element_type=jnp.float32)
    out_ref[...] = q + b4_ref[0, 0]


def _round_up(x, m):
    return ((x + m - 1) // m) * m


def critic_forward(state, action, params, *, leak=0.01, eps=1e-5, max_tile=4096):
    """state: (B, S) f32, action: (B, A) f32 -> Q-values (B, 1) f32."""
    B, S = state.shape
    A = action.shape[1]
    SA = S + A
    H1 = params["w1"].shape[1]
    H2 = params["w2"].shape[1]
    H3 = params["w3"].shape[1]

    x = state.astype(jnp.float32)

    # --- BN (training-mode, full-batch stats): centered variance for
    #     numerical stability, folded into fc1's weight/bias.
    mean = jnp.mean(x, axis=0, keepdims=True)                       # (1, S)
    var = jnp.mean(jnp.square(x - mean), axis=0, keepdims=True)     # biased var
    scale = params["gamma"] * jax.lax.rsqrt(var + eps)              # (1, S)
    shift = params["beta"] - mean * scale                           # (1, S)
    w1_eff = params["w1"] * scale.T                                 # (S, H1)
    b1_eff = (shift @ params["w1"] + params["b1"]).astype(jnp.float32)

    # --- merge state|action; zero-pad w1 (trailing A rows) and w2's action
    #     branch (leading S rows) so both matmuls read the merged tile.
    sa = jnp.concatenate([x, action.astype(jnp.float32)], axis=1).astype(jnp.bfloat16)
    w1_pad = jnp.zeros((SA, H1), jnp.float32).at[:S].set(w1_eff).astype(jnp.bfloat16)
    w2_s = params["w2"][:H1].astype(jnp.bfloat16)                   # (H1, H2)
    w2a_pad = (jnp.zeros((SA, H2), jnp.float32)
               .at[S:].set(params["w2"][H1:]).astype(jnp.bfloat16))  # (S+A, H2)
    w3 = params["w3"].astype(jnp.bfloat16)                          # (H2, H3)
    w4_row = params["w4"].T.astype(jnp.bfloat16)                    # (1, H3)
    b2 = params["b2"].astype(jnp.float32)
    b3 = params["b3"].astype(jnp.float32)
    b4 = params["b4"].reshape(1, 1).astype(jnp.float32)             # SMEM scalar

    # --- batch tile: full batch if small; otherwise >=2 tiles (v7x megacore)
    #     rounded to 128 so every block stays (8,128)-aligned.
    if B <= 256:
        TB = B
    else:
        TB = min(max_tile, _round_up(pl.cdiv(B, 2), 128))
    grid = (pl.cdiv(B, TB),)
    # NOTE: if B % TB != 0, the last tile's padding rows carry undefined values
    # through the matmul chain; this is safe because nothing reduces across
    # rows and Pallas clips the output writeback to (1, B).

    def resident(arr):
        # Full-array block + constant index_map -> stays resident in VMEM.
        return pl.BlockSpec(arr.shape, lambda i: (0, 0), memory_space=pltpu.VMEM)

    in_specs = [
        pl.BlockSpec((TB, SA), lambda i: (i, 0), memory_space=pltpu.VMEM),  # [state|action]
        resident(w1_pad), resident(b1_eff),
        resident(w2_s), resident(w2a_pad), resident(b2),
        resident(w3), resident(b3),
        resident(w4_row),
        pl.BlockSpec(memory_space=pltpu.MemorySpace.SMEM),                  # b4 scalar
    ]
    out_spec = pl.BlockSpec((1, TB), lambda i: (0, i), memory_space=pltpu.VMEM)

    weight_elems = SA * H1 + H1 * H2 + SA * H2 + H2 * H3 + H3
    cost = pl.CostEstimate(
        flops=2 * B * weight_elems,
        transcendentals=0,
        bytes_accessed=B * SA * 2 + B * 4 + weight_elems * 2 + (H1 + H2 + H3 + 1) * 4,
    )

    kernel = functools.partial(_critic_kernel, leak=leak)
    out_row = pl.pallas_call(
        kernel,
        out_shape=jax.ShapeDtypeStruct((1, B), jnp.float32),
        grid=grid,
        in_specs=in_specs,
        out_specs=out_spec,
        compiler_params=pltpu.CompilerParams(
            dimension_semantics=("parallel",),
            vmem_limit_bytes=32 * 1024 * 1024,
        ),
        cost_estimate=cost,
    )(sa, w1_pad, b1_eff, w2_s, w2a_pad, b2, w3, b3, w4_row, b4)

    return out_row.reshape(B, 1)


def init_critic_params(key, state_size, action_size,
                       hidden_sizes=(256, 128, 128), leak=0.01):
    """Synthetic init mirroring the PyTorch module.

    fc1/fc2: Kaiming-normal fan_in with a=leak; fc3 weight: U(-3e-3, 3e-3);
    fc4 weight + all biases: PyTorch Linear default U(-1/sqrt(fan_in), +);
    BN affine: gamma=1, beta=0.  Weights stored (in, out).
    """
    h1, h2, h3 = hidden_sizes
    keys = jax.random.split(key, 8)

    def kaiming(k, fan_in, fan_out):
        std = (2.0 / ((1.0 + leak ** 2) * fan_in)) ** 0.5
        return std * jax.random.normal(k, (fan_in, fan_out), jnp.float32)

    def default_w(k, fan_in, fan_out):
        bound = 1.0 / (fan_in ** 0.5)
        return jax.random.uniform(k, (fan_in, fan_out), jnp.float32, -bound, bound)

    def bias(k, fan_in, n):
        bound = 1.0 / (fan_in ** 0.5)
        return jax.random.uniform(k, (1, n), jnp.float32, -bound, bound)

    return {
        "gamma": jnp.ones((1, state_size), jnp.float32),
        "beta": jnp.zeros((1, state_size), jnp.float32),
        "w1": kaiming(keys[0], state_size, h1),
        "b1": bias(keys[1], state_size, h1),
        "w2": kaiming(keys[2], h1 + action_size, h2),
        "b2": bias(keys[3], h1 + action_size, h2),
        "w3": jax.random.uniform(keys[4], (h2, h3), jnp.float32, -3e-3, 3e-3),
        "b3": bias(keys[5], h2, h3),
        "w4": default_w(keys[6], h3, 1),
        "b4": bias(keys[7], h3, 1),
    }


def critic_ref(state, action, params, *, leak=0.01, eps=1e-5):
    """Pure-JAX f32 reference matching the PyTorch forward (with concat)."""
    x = state
    mean = jnp.mean(x, axis=0, keepdims=True)
    var = jnp.mean((x - mean) ** 2, axis=0, keepdims=True)
    xn = (x - mean) / jnp.sqrt(var + eps) * params["gamma"] + params["beta"]
    h1 = xn @ params["w1"] + params["b1"]
    h1 = jnp.where(h1 > 0, h1, leak * h1)
    h = jnp.concatenate([h1, action], axis=1)
    h2 = h @ params["w2"] + params["b2"]
    h2 = jnp.where(h2 > 0, h2, leak * h2)
    h3 = h2 @ params["w3"] + params["b3"]
    h3 = jnp.where(h3 > 0, h3, leak * h3)
    return h3 @ params["w4"] + params["b4"]


if __name__ == "__main__":
    key = jax.random.PRNGKey(0)
    k_state, k_action, k_params = jax.random.split(key, 3)

    batch = 8
    state_size = 16
    action_size = 4
    hidden_sizes = (256, 128, 128)
    leak = 0.01

    state = jax.random.normal(k_state, (batch, state_size), jnp.float32)
    action = jax.random.normal(k_action, (batch, action_size), jnp.float32)
    params = init_critic_params(k_params, state_size, action_size, hidden_sizes, leak)

    out = critic_forward(state, action, params, leak=leak)
    out = jax.block_until_ready(out)

    ref = critic_ref(state, action, params, leak=leak)
    assert out.shape == (batch, 1)
    # bf16 matmul operands -> loosened tolerance vs the f32 reference.
    assert jnp.allclose(out, ref, atol=2e-2, rtol=2e-2), "mismatch vs JAX reference"

    print("KERNEL_OK")
</pallas_src>

<mosaic_0001>
module attributes {stable_mosaic.version = 11 : i64} {
  func.func @_critic_kernel(%arg0: i32, %arg1: memref<8x20xbf16, #tpu.memory_space<vmem>>, %arg2: memref<20x256xbf16, #tpu.memory_space<vmem>>, %arg3: memref<1x256xf32, #tpu.memory_space<vmem>>, %arg4: memref<256x128xbf16, #tpu.memory_space<vmem>>, %arg5: memref<20x128xbf16, #tpu.memory_space<vmem>>, %arg6: memref<1x128xf32, #tpu.memory_space<vmem>>, %arg7: memref<128x128xbf16, #tpu.memory_space<vmem>>, %arg8: memref<1x128xf32, #tpu.memory_space<vmem>>, %arg9: memref<1x128xbf16, #tpu.memory_space<vmem>>, %arg10: memref<1x1xf32, #tpu.memory_space<smem>>, %arg11: memref<1x8xf32, #tpu.memory_space<vmem>>) attributes {dimension_semantics = [#tpu.dimension_semantics<parallel>], iteration_bounds = array<i64: 1>, scalar_prefetch = 0 : i64, scratch_operands = 0 : i64, tpu.core_type = #tpu.core_type<tc>, window_params = [{transform_indices = @transform_0, window_bounds = array<i64: 8, 20>}, {pipeline_mode = #tpu.pipeline_mode<synchronous>, transform_indices = @transform_1, window_bounds = array<i64: 20, 256>}, {pipeline_mode = #tpu.pipeline_mode<synchronous>, transform_indices = @transform_2, window_bounds = array<i64: 1, 256>}, {pipeline_mode = #tpu.pipeline_mode<synchronous>, transform_indices = @transform_3, window_bounds = array<i64: 256, 128>}, {pipeline_mode = #tpu.pipeline_mode<synchronous>, transform_indices = @transform_4, window_bounds = array<i64: 20, 128>}, {pipeline_mode = #tpu.pipeline_mode<synchronous>, transform_indices = @transform_5, window_bounds = array<i64: 1, 128>}, {pipeline_mode = #tpu.pipeline_mode<synchronous>, transform_indices = @transform_6, window_bounds = array<i64: 128, 128>}, {pipeline_mode = #tpu.pipeline_mode<synchronous>, transform_indices = @transform_7, window_bounds = array<i64: 1, 128>}, {pipeline_mode = #tpu.pipeline_mode<synchronous>, transform_indices = @transform_8, window_bounds = array<i64: 1, 128>}, {transform_indices = @transform_9, window_bounds = array<i64: 1, 1>}, {transform_indices = @transform_10, window_bounds = array<i64: 1, 8>}]} {
    %c0 = arith.constant 0 : index
    %c0_0 = arith.constant 0 : index
    %0 = vector.load %arg1[%c0, %c0_0] : memref<8x20xbf16, #tpu.memory_space<vmem>>, vector<8x20xbf16>
    %c0_1 = arith.constant 0 : index
    %c0_2 = arith.constant 0 : index
    %1 = vector.load %arg2[%c0_1, %c0_2] : memref<20x256xbf16, #tpu.memory_space<vmem>>, vector<20x256xbf16>
    %cst = arith.constant dense<0.000000e+00> : vector<8x256xf32>
    %2 = tpu.matmul %0, %1, %cst {dimension_numbers = #tpu.dot_dimension_numbers<[1], [0], [0], [1], [0, 0, 1, 1], [], []>} : vector<8x20xbf16>, vector<20x256xbf16>, vector<8x256xf32> -> vector<8x256xf32>
    %c0_3 = arith.constant 0 : index
    %c0_4 = arith.constant 0 : index
    %3 = vector.load %arg3[%c0_3, %c0_4] : memref<1x256xf32, #tpu.memory_space<vmem>>, vector<1x256xf32>
    %4 = vector.broadcast %3 : vector<1x256xf32> to vector<8x256xf32>
    %5 = arith.addf %2, %4 : vector<8x256xf32>
    %cst_5 = arith.constant 0.000000e+00 : f32
    %6 = vector.broadcast %cst_5 : f32 to vector<8x256xf32>
    %7 = arith.cmpf ogt, %5, %6 : vector<8x256xf32>
    %cst_6 = arith.constant 0.00999999977 : f32
    %8 = vector.broadcast %cst_6 : f32 to vector<8x256xf32>
    %9 = arith.mulf %8, %5 : vector<8x256xf32>
    %10 = arith.select %7, %5, %9 : vector<8x256xi1>, vector<8x256xf32>
    %11 = arith.truncf %10 : vector<8x256xf32> to vector<8x256xbf16>
    %c0_7 = arith.constant 0 : index
    %c0_8 = arith.constant 0 : index
    %12 = vector.load %arg4[%c0_7, %c0_8] : memref<256x128xbf16, #tpu.memory_space<vmem>>, vector<256x128xbf16>
    %cst_9 = arith.constant dense<0.000000e+00> : vector<8x128xf32>
    %13 = tpu.matmul %11, %12, %cst_9 {dimension_numbers = #tpu.dot_dimension_numbers<[1], [0], [0], [1], [0, 0, 1, 1], [], []>} : vector<8x256xbf16>, vector<256x128xbf16>, vector<8x128xf32> -> vector<8x128xf32>
    %c0_10 = arith.constant 0 : index
    %c0_11 = arith.constant 0 : index
    %14 = vector.load %arg5[%c0_10, %c0_11] : memref<20x128xbf16, #tpu.memory_space<vmem>>, vector<20x128xbf16>
    %cst_12 = arith.constant dense<0.000000e+00> : vector<8x128xf32>
    %15 = tpu.matmul %0, %14, %cst_12 {dimension_numbers = #tpu.dot_dimension_numbers<[1], [0], [0], [1], [0, 0, 1, 1], [], []>} : vector<8x20xbf16>, vector<20x128xbf16>, vector<8x128xf32> -> vector<8x128xf32>
    %16 = arith.addf %13, %15 : vector<8x128xf32>
    %c0_13 = arith.constant 0 : index
    %c0_14 = arith.constant 0 : index
    %17 = vector.load %arg6[%c0_13, %c0_14] : memref<1x128xf32, #tpu.memory_space<vmem>>, vector<1x128xf32>
    %18 = vector.broadcast %17 : vector<1x128xf32> to vector<8x128xf32>
    %19 = arith.addf %16, %18 : vector<8x128xf32>
    %cst_15 = arith.constant 0.000000e+00 : f32
    %20 = vector.broadcast %cst_15 : f32 to vector<8x128xf32>
    %21 = arith.cmpf ogt, %19, %20 : vector<8x128xf32>
    %cst_16 = arith.constant 0.00999999977 : f32
    %22 = vector.broadcast %cst_16 : f32 to vector<8x128xf32>
    %23 = arith.mulf %22, %19 : vector<8x128xf32>
    %24 = arith.select %21, %19, %23 : vector<8x128xi1>, vector<8x128xf32>
    %25 = arith.truncf %24 : vector<8x128xf32> to vector<8x128xbf16>
    %c0_17 = arith.constant 0 : index
    %c0_18 = arith.constant 0 : index
    %26 = vector.load %arg7[%c0_17, %c0_18] : memref<128x128xbf16, #tpu.memory_space<vmem>>, vector<128x128xbf16>
    %cst_19 = arith.constant dense<0.000000e+00> : vector<8x128xf32>
    %27 = tpu.matmul %25, %26, %cst_19 {dimension_numbers = #tpu.dot_dimension_numbers<[1], [0], [0], [1], [0, 0, 1, 1], [], []>} : vector<8x128xbf16>, vector<128x128xbf16>, vector<8x128xf32> -> vector<8x128xf32>
    %c0_20 = arith.constant 0 : index
    %c0_21 = arith.constant 0 : index
    %28 = vector.load %arg8[%c0_20, %c0_21] : memref<1x128xf32, #tpu.memory_space<vmem>>, vector<1x128xf32>
    %29 = vector.broadcast %28 : vector<1x128xf32> to vector<8x128xf32>
    %30 = arith.addf %27, %29 : vector<8x128xf32>
    %cst_22 = arith.constant 0.000000e+00 : f32
    %31 = vector.broadcast %cst_22 : f32 to vector<8x128xf32>
    %32 = arith.cmpf ogt, %30, %31 : vector<8x128xf32>
    %cst_23 = arith.constant 0.00999999977 : f32
    %33 = vector.broadcast %cst_23 : f32 to vector<8x128xf32>
    %34 = arith.mulf %33, %30 : vector<8x128xf32>
    %35 = arith.select %32, %30, %34 : vector<8x128xi1>, vector<8x128xf32>
    %c0_24 = arith.constant 0 : index
    %c0_25 = arith.constant 0 : index
    %36 = vector.load %arg9[%c0_24, %c0_25] : memref<1x128xbf16, #tpu.memory_space<vmem>>, vector<1x128xbf16>
    %37 = arith.truncf %35 : vector<8x128xf32> to vector<8x128xbf16>
    %cst_26 = arith.constant dense<0.000000e+00> : vector<1x8xf32>
    %38 = tpu.matmul %36, %37, %cst_26 {dimension_numbers = #tpu.dot_dimension_numbers<[1], [1], [0], [0], [0, 0, 1, 0], [], []>} : vector<1x128xbf16>, vector<8x128xbf16>, vector<1x8xf32> -> vector<1x8xf32>
    %c0_27 = arith.constant 0 : index
    %c0_28 = arith.constant 0 : index
    %39 = memref.load %arg10[%c0_27, %c0_28] : memref<1x1xf32, #tpu.memory_space<smem>>
    %40 = vector.broadcast %39 : f32 to vector<1x8xf32>
    %41 = arith.addf %38, %40 : vector<1x8xf32>
    %c0_29 = arith.constant 0 : index
    %c0_30 = arith.constant 0 : index
    %42 = vector.load %arg11[%c0_29, %c0_30] : memref<1x8xf32, #tpu.memory_space<vmem>>, vector<1x8xf32>
    tpu.vector_store %arg11[%c0_29, %c0_30], %41 {strides = array<i32>} : memref<1x8xf32, #tpu.memory_space<vmem>>, vector<1x8xf32>,
    return
  }
  func.func @transform_0(%arg0: i32) -> (i32, i32) {
    %c0_i32 = arith.constant 0 : i32
    %c0_i32_0 = arith.constant 0 : i32
    return %arg0, %c0_i32 : i32, i32
  }
  func.func @transform_1(%arg0: i32) -> (i32, i32) {
    %c0_i32 = arith.constant 0 : i32
    %c0_i32_0 = arith.constant 0 : i32
    %c0_i32_1 = arith.constant 0 : i32
    return %c0_i32, %c0_i32_0 : i32, i32
  }
  func.func @transform_2(%arg0: i32) -> (i32, i32) {
    %c0_i32 = arith.constant 0 : i32
    %c0_i32_0 = arith.constant 0 : i32
    %c0_i32_1 = arith.constant 0 : i32
    return %c0_i32, %c0_i32_0 : i32, i32
  }
  func.func @transform_3(%arg0: i32) -> (i32, i32) {
    %c0_i32 = arith.constant 0 : i32
    %c0_i32_0 = arith.constant 0 : i32
    %c0_i32_1 = arith.constant 0 : i32
    return %c0_i32, %c0_i32_0 : i32, i32
  }
  func.func @transform_4(%arg0: i32) -> (i32, i32) {
    %c0_i32 = arith.constant 0 : i32
    %c0_i32_0 = arith.constant 0 : i32
    %c0_i32_1 = arith.constant 0 : i32
    return %c0_i32, %c0_i32_0 : i32, i32
  }
  func.func @transform_5(%arg0: i32) -> (i32, i32) {
    %c0_i32 = arith.constant 0 : i32
    %c0_i32_0 = arith.constant 0 : i32
    %c0_i32_1 = arith.constant 0 : i32
    return %c0_i32, %c0_i32_0 : i32, i32
  }
  func.func @transform_6(%arg0: i32) -> (i32, i32) {
    %c0_i32 = arith.constant 0 : i32
    %c0_i32_0 = arith.constant 0 : i32
    %c0_i32_1 = arith.constant 0 : i32
    return %c0_i32, %c0_i32_0 : i32, i32
  }
  func.func @transform_7(%arg0: i32) -> (i32, i32) {
    %c0_i32 = arith.constant 0 : i32
    %c0_i32_0 = arith.constant 0 : i32
    %c0_i32_1 = arith.constant 0 : i32
    return %c0_i32, %c0_i32_0 : i32, i32
  }
  func.func @transform_8(%arg0: i32) -> (i32, i32) {
    %c0_i32 = arith.constant 0 : i32
    %c0_i32_0 = arith.constant 0 : i32
    %c0_i32_1 = arith.constant 0 : i32
    return %c0_i32, %c0_i32_0 : i32, i32
  }
  func.func @transform_9(%arg0: i32) -> (i32, i32) {
    %c0_i32 = arith.constant 0 : i32
    %c0_i32_0 = arith.constant 0 : i32
    %c0_i32_1 = arith.constant 0 : i32
    return %c0_i32, %c0_i32_0 : i32, i32
  }
  func.func @transform_10(%arg0: i32) -> (i32, i32) {
    %c0_i32 = arith.constant 0 : i32
    %c0_i32_0 = arith.constant 0 : i32
    return %c0_i32, %arg0 : i32, i32
  }
}

</mosaic_0001>

<bundles_post_ra>
// kernel: tpu_custom_call.1
= control target key start
LH: loop header
LB: loop body
LE: loop exit
PB: predicated region body
PF: predicated region fallthrough
CT: control target
= control target key end

     0   :  { %16 = vsyncpa [#allocation4], 0  ;;  %s1030_s0 = inlined_call_operand.hbm [shape: bf16[8,20], index: 0, kind: input, shape index: {}]   ;;  %s1031_s1 = inlined_call_operand.hbm [shape: bf16[20,256], index: 1, kind: input, shape index: {}]   ;;  %s1032_s2 = inlined_call_operand.vmem [shape: f32[1,256], index: 2, kind: input, shape index: {}]   ;;  %s1033_s3 = inlined_call_operand.hbm [shape: bf16[256,128], index: 3, kind: input, shape index: {}]   ;;  %s1034_s4 = inlined_call_operand.vmem [shape: bf16[20,128], index: 4, kind: input, shape index: {}]   ;;  %s1035_s5 = inlined_call_operand.vmem [shape: f32[1,128], index: 5, kind: input, shape index: {}]   ;;  %s1036_s6 = inlined_call_operand.hbm [shape: bf16[128,128], index: 6, kind: input, shape index: {}]   ;;  %s1037_s7 = inlined_call_operand.vmem [shape: f32[1,128], index: 7, kind: input, shape index: {}]   ;;  %s1038_s8 = inlined_call_operand.vmem [shape: bf16[1,128], index: 8, kind: input, shape index: {}]   ;;  %s1039_s9 = inlined_call_operand.<no memory space> [shape: f32[1,1], index: 9, kind: input, shape index: {}]   ;;  %s1040_s10 = inlined_call_operand.hbm [shape: f32[1,8], index: 10, kind: output, shape index: {}]  }
   0x1   :  { %17 = vsyncpa [#allocation7], 0 }
   0x2   :  { %18 = vsyncpa [#allocation10], 0 }
   0x3   :  { %19 = vsyncpa [#allocation5], 0  ;;  %s860_s13 = smov [#allocation6]   ;;  %s742_s17 = scalar_lea.hbm %s1031_s1, 384 }
   0x4   :  { %s35_s14 = sshll.u32 %s860_s13, 4  ;;  %p743_p0 = scmp.ne.s32.totalorder %s1031_s1, %s742_s17  ;;  %s36_s14 = int_to_ptr.vmem [resolvable:$true] %s35_s14 }
   0x5   :  { %p746_p1 = scmp.lt.u32.totalorder %s742_s17, %s1031_s1 }
   0x7   :  { %p748_p2 = pnand %p746_p1, %p743_p0 }
   0x9   :  { %751 = shalt.err (!%p748_p2)
}
   0xa   :  { %s752_s22 = scalar_lea.vmem %s36_s14, 384  ;;  %p757_p4 = scmp.lt.s32.totalorder %s36_s14, %s36_s14 }
   0xb   :  { %p753_p3 = scmp.ne.s32.totalorder %s36_s14, %s752_s22  ;;  %p758_p5 = scmp.lt.s32.totalorder %s752_s22, %s752_s22 }
   0xd   :  { %p759_p6 = por %p758_p5, %p757_p4 }
   0xf   :  { %p760_p7 = pnand %p759_p6, %p753_p3 }
  0x11   :  { %763 = shalt.err (!%p760_p7)
}
  0x12   :  { %s861_s23 = smov 128   ;;  %s862_s24 = smov 8  }
  0x13   :  { %41 = dma.hbm_to_vmem [thread:$0]  %s1031_s1, 384, %s36_s14, [#allocation7], %s861_s23, %s861_s23, %s862_s24  }
  0x14   :  { %s863_s27 = smov [#allocation3]   ;;  %s864_s29 = smov [#allocation8]  }
  0x15   :  { %s26_s28 = sshll.u32 %s863_s27, 4  ;;  %s49_s30 = sshll.u32 %s864_s29, 4  ;;  %s27_s28 = int_to_ptr.vmem [resolvable:$true] %s26_s28  ;;  %s50_s30 = int_to_ptr.vmem [resolvable:$true] %s49_s30 }
  0x16   :  { %s764_s13 = scalar_lea.hbm %s1030_s0, 64 }
  0x17   :  { %p765_p8 = scmp.ne.s32.totalorder %s1030_s0, %s764_s13  ;;  %p768_p9 = scmp.lt.u32.totalorder %s764_s13, %s1030_s0 }
  0x19   :  { %p770_p10 = pnand %p768_p9, %p765_p8 }
  0x1b   :  { %773 = shalt.err (!%p770_p10)
}
  0x1c   :  { %s774_s1 = scalar_lea.vmem %s27_s28, 64  ;;  %p779_p12 = scmp.lt.s32.totalorder %s27_s28, %s27_s28 }
  0x1d   :  { %p775_p11 = scmp.ne.s32.totalorder %s27_s28, %s774_s1  ;;  %p780_p13 = scmp.lt.s32.totalorder %s774_s1, %s774_s1 }
  0x1f   :  { %p781_p0 = por %p780_p13, %p779_p12 }
  0x21   :  { %p782_p1 = pnand %p781_p0, %p775_p11 }
  0x23   :  { %785 = shalt.err (!%p782_p1)
}
  0x24   :  { %29 = dma.hbm_to_vmem [thread:$0]  %s1030_s0, 64, %s27_s28, [#allocation4]  }
  0x25   :  { %s786_s22 = scalar_lea.hbm %s1033_s3, 2048 }
  0x26   :  { %p787_p2 = scmp.ne.s32.totalorder %s1033_s3, %s786_s22  ;;  %p790_p3 = scmp.lt.u32.totalorder %s786_s22, %s1033_s3 }
  0x28   :  { %p792_p4 = pnand %p790_p3, %p787_p2 }
  0x2a   :  { %795 = shalt.err (!%p792_p4)
}
  0x2b   :  { %s796_s27 = scalar_lea.vmem %s50_s30, 2048  ;;  %p801_p6 = scmp.lt.s32.totalorder %s50_s30, %s50_s30 }
  0x2c   :  { %p797_p5 = scmp.ne.s32.totalorder %s50_s30, %s796_s27  ;;  %p802_p7 = scmp.lt.s32.totalorder %s796_s27, %s796_s27 }
  0x2e   :  { %p803_p8 = por %p802_p7, %p801_p6 }
  0x30   :  { %p804_p9 = pnand %p803_p8, %p797_p5 }
  0x32   :  { %807 = shalt.err (!%p804_p9)
}
  0x33   :  { %s865_s0 = smov 64   ;;  %s866_s28 = smov 4  }
  0x34   :  { %55 = dma.hbm_to_vmem [thread:$0]  %s1033_s3, 2048, %s50_s30, [#allocation7], %s865_s0, %s865_s0, %s866_s28  }
  0x35   :  { %s867_s12 = smov [#allocation9]   ;;  %s808_s17 = scalar_lea.hbm %s1036_s6, 1024 }
  0x36   :  { %s65_s13 = sshll.u32 %s867_s12, 4  ;;  %p809_p10 = scmp.ne.s32.totalorder %s1036_s6, %s808_s17  ;;  %s66_s13 = int_to_ptr.vmem [resolvable:$true] %s65_s13 }
  0x37   :  { %p812_p11 = scmp.lt.u32.totalorder %s808_s17, %s1036_s6 }
  0x39   :  { %p814_p12 = pnand %p812_p11, %p809_p10 }
  0x3b   :  { %817 = shalt.err (!%p814_p12)
}
  0x3c   :  { %s818_s20 = scalar_lea.vmem %s66_s13, 1024  ;;  %p823_p0 = scmp.lt.s32.totalorder %s66_s13, %s66_s13 }
  0x3d   :  { %p819_p13 = scmp.ne.s32.totalorder %s66_s13, %s818_s20  ;;  %p824_p1 = scmp.lt.s32.totalorder %s818_s20, %s818_s20 }
  0x3f   :  { %p825_p2 = por %p824_p1, %p823_p0 }
  0x41   :  { %p826_p3 = pnand %p825_p2, %p819_p13 }
  0x43   :  { %829 = shalt.err (!%p826_p3)
}
  0x44   :  { %71 = dma.hbm_to_vmem [thread:$0]  %s1036_s6, 1024, %s66_s13, [#allocation10], %s865_s0, %s865_s0, %s866_s28  }
  0x45   :  { %852 = dma.done.wait [#allocation4], 64  }
  0x46   :  { %853 = vsyncadd [#allocation4], 4294967232 }
  0x47   :  { %854 = dma.done.wait [#allocation7], 2432  }
  0x48   :  { %855 = vsyncadd [#allocation7], 4294964864 }
  0x49   :  { %856 = dma.done.wait [#allocation10], 1024  }
  0x4a   :  { %857 = vsyncadd [#allocation10], 4294966272  ;;  %v868_v0 = vmov 0   ;;  %v711_v1 = vld [vmem:[#allocation6 + $0x4] ss:$8 sps:$4 sm:$0xff]   ;;  %vm126_vm0 = vcmask 1041408   ;;  %v97_v33 = vlaneseq }
  0x4b   :  { %165 = vmatprep.mubr.bf16.mxu0 %v868_v0  ;;  %v713_v2 = vld [vmem:[#allocation6] ss:$8 sps:$4 sm:$0xff]   ;;  %v94_v3 = vld [vmem:[#allocation6 + $0x10] sm:$0x33]  ;;  %133 = vmatprep.subr.bf16.mxu0 %v711_v1  ;;  %v716_v7 = vld [vmem:[#allocation8 + $0x40] sm:$0xff]   ;;  %vm122_vm1 = vcmask 162816  }
  0x4c   :  { %v597_v4 = vcombine.high %v94_v3, %v94_v3  ;;  %v596_v5 = vcombine.low %v94_v3, %v94_v3  ;;  %134 = vmatpush1.bf16.msra.mxu0 %v713_v2  ;;  %v91_v8 = vld [vmem:[#allocation3] sm:$0xf]  ;;  %v718_v10 = vld [vmem:[#allocation8 + $0x48] sm:$0xff]   ;;  %v720_v12 = vld [vmem:[#allocation8 + $0x50] sm:$0xff]   ;;  %v869_v23 = vmov 0.0   ;;  %vm870_vm2 = vmmov 0  }
  0x4d   :  { %v717_v9 = vld [vmem:[#allocation8] sm:$0xff]   ;;  %v719_v11 = vld [vmem:[#allocation8 + $0x8] sm:$0xff]   ;;  %v721_v13 = vld [vmem:[#allocation8 + $0x10] sm:$0xff]   ;;  %665 = vmatprep.subr.bf16.mxu1 %v869_v23  ;;  %669 = vmatprep.mubr.msk.bf16.mxu1 %vm870_vm2, %v869_v23  ;;  %v98_v34 = vshrl.u32 %v97_v33, 7  ;;  %vm575_vm7 = vcmask 57344  }
  0x4e   :  { %598 = vmatprep.subr.msk.bf16.mxu0 %vm126_vm0, %v597_v4  ;;  %v128_v6 = vsel %vm126_vm0, %v596_v5, 0  ;;  %v722_v14 = vld [vmem:[#allocation8 + $0x58] sm:$0xff]   ;;  %v724_v16 = vld [vmem:[#allocation8 + $0x60] sm:$0xff]   ;;  %v726_v18 = vld [vmem:[#allocation8 + $0x68] sm:$0xff]  }
  0x4f   :  { %v723_v15 = vld [vmem:[#allocation8 + $0x18] sm:$0xff]   ;;  %v725_v17 = vld [vmem:[#allocation8 + $0x20] sm:$0xff]   ;;  %v727_v19 = vld [vmem:[#allocation8 + $0x28] sm:$0xff]   ;;  %v99_v35 = vsub.s32 0, %v98_v34  ;;  %v103_v37 = vsub.s32 1, %v98_v34 }
  0x50   :  { %136 = vmatpush1.bf16.msra.mxu0 %v128_v6  ;;  %v728_v20 = vld [vmem:[#allocation8 + $0x70] sm:$0xff]   ;;  %v729_v21 = vld [vmem:[%s1034_s4] sm:$0xff]   ;;  %v731_v24 = vld [vmem:[#allocation8 + $0x78] sm:$0xff]  }
  0x51   :  { %632 = vmatprep.subr.bf16.mxu0 %v716_v7  ;;  %v730_v22 = vld [vmem:[#allocation8 + $0x30] sm:$0xff]   ;;  %666 = vmatpush3.bf16.msra.mxu1 %v729_v21  ;;  %v732_v25 = vld [vmem:[%s1034_s4 + $0x8] ss:$0 sps:$4 sm:$0x33]   ;;  %v733_v26 = vld [vmem:[#allocation8 + $0x38] sm:$0xff]  }
  0x52   :  { %667 = vmatprep.subr.bf16.mxu1 %v869_v23  ;;  %v227_v27 = vsel %vm126_vm0, %v732_v25, 0  ;;  %v734_v28 = vld [vmem:[#allocation9] sm:$0xff]   ;;  %v735_v29 = vld [vmem:[#allocation9 + $0x8] sm:$0xff]   ;;  %v736_v30 = vld [vmem:[#allocation9 + $0x10] sm:$0xff]  }
  0x53   :  { %599 = vmatmul.mubr.msk.bf16.vlgmr.msra.gmra.mrb[0].mxu0 %vm122_vm1, %v91_v8  ;;  %v737_v31 = vld [vmem:[#allocation9 + $0x18] sm:$0xff]   ;;  %v738_v32 = vld [vmem:[#allocation9 + $0x20] sm:$0xff]   ;;  %v739_v53 = vld [vmem:[#allocation9 + $0x28] sm:$0xff]  }
  0x54   :  { %633 = vmatpush3.bf16.msra.mxu0 %v717_v9  ;;  %v95_v36 = vld [vmem:[%s1032_s2] sm:$0x3]  ;;  %v740_v57 = vld [vmem:[#allocation9 + $0x30] sm:$0xff]   ;;  %v741_v58 = vld [vmem:[#allocation9 + $0x38] sm:$0xff]  }
  0x55   :  { %634 = vmatprep.subr.bf16.mxu0 %v718_v10  ;;  %668 = vmatpush3.bf16.msra.mxu1 %v227_v27  ;;  %v100_v38 = vrot.slane %v95_v36, %v99_v35  ;;  %v104_v39 = vrot.slane %v95_v36, %v103_v37  ;;  %v619_v63 = vld [vmem:[%s1035_s5] ss:$0 sm:$0xff] }
  0x56   :  { %673 = vmatprep.subr.bf16.mxu1 %v869_v23  ;;  %v620_v6 = vld [vmem:[%s1037_s7] ss:$0 sm:$0xff]  ;;  %s871_s7 = smov [#allocation11]  }
  0x57   :  { %s583_s11 = sshll.u32 %s871_s7, 4  ;;  %s584_s11 = int_to_ptr.vmem [resolvable:$true] %s583_s11 }
  0x58   :  { %635 = vmatpush3.bf16.msra.mxu0 %v719_v11  ;;  %670 = vmatmul.mubr.msk.bf16.vlgmr.msra.gmra.mrb[0].mxu1 %vm122_vm1, %v91_v8  ;;  %s830_s12 = scalar_lea.vmem %s584_s11, 16  ;;  %s834_s13 = scalar_lea.vmem %s584_s11, 32 }
  0x59   :  { %636 = vmatprep.subr.bf16.mxu0 %v720_v12  ;;  %689 = vmatprep.mubr.msk.bf16.mxu1 %vm870_vm2, %v869_v23  ;;  %p831_p4 = scmp.ne.s32.totalorder %s584_s11, %s830_s12  ;;  %p835_p5 = scmp.lt.s32.totalorder %s584_s11, %s584_s11 }
  0x5a   :  { %674 = vmatpush3.bf16.msra.mxu1 %v734_v28  ;;  %p836_p6 = scmp.lt.s32.totalorder %s834_s13, %s830_s12 }
  0x5b   :  { %675 = vmatprep.subr.bf16.mxu1 %v869_v23 }
  0x5c   :  { %637 = vmatpush3.bf16.msra.mxu0 %v721_v13  ;;  %p837_p7 = por %p836_p6, %p835_p5 }
  0x5d   :  { %638 = vmatprep.subr.bf16.mxu0 %v722_v14 }
  0x5e   :  { %676 = vmatpush3.bf16.msra.mxu1 %v735_v29  ;;  %p838_p8 = pnand %p837_p7, %p831_p4 }
  0x5f   :  { %677 = vmatprep.subr.bf16.mxu1 %v869_v23 }
  0x60   :  { %639 = vmatpush3.bf16.msra.mxu0 %v723_v15  ;;  %v531_v15 = vld [vmem:[%s1038_s8] sm:$0x1] }
  0x61   :  { %640 = vmatprep.subr.bf16.mxu0 %v724_v16  ;;  %v534_v16 = vstv %s1039_s9 }
  0x62   :  { %678 = vmatpush3.bf16.msra.mxu1 %v736_v30 }
  0x63   :  { %679 = vmatprep.subr.bf16.mxu1 %v869_v23 }
  0x64   :  { %641 = vmatpush3.bf16.msra.mxu0 %v725_v17 }
  0x65   :  { %642 = vmatprep.subr.bf16.mxu0 %v726_v18 }
  0x66   :  { %680 = vmatpush3.bf16.msra.mxu1 %v737_v31 }
  0x67   :  { %681 = vmatprep.subr.bf16.mxu1 %v869_v23 }
  0x68   :  { %643 = vmatpush3.bf16.msra.mxu0 %v727_v19 }
  0x69   :  { %644 = vmatprep.subr.bf16.mxu0 %v728_v20 }
  0x6a   :  { %682 = vmatpush3.bf16.msra.mxu1 %v738_v32 }
  0x6b   :  { %683 = vmatprep.subr.bf16.mxu1 %v869_v23 }
  0x6c   :  { %645 = vmatpush3.bf16.msra.mxu0 %v730_v22 }
  0x6d   :  { %646 = vmatprep.subr.bf16.mxu0 %v731_v24 }
  0x6e   :  { %684 = vmatpush3.bf16.msra.mxu1 %v739_v53 }
  0x6f   :  { %685 = vmatprep.subr.bf16.mxu1 %v869_v23 }
  0x70   :  { %647 = vmatpush3.bf16.msra.mxu0 %v733_v26 }
  0x71   :  { %693 = vmatprep.subr.bf16.mxu0 %v869_v23 }
  0x72   :  { %686 = vmatpush3.bf16.msra.mxu1 %v740_v57 }
  0x73   :  { %687 = vmatprep.subr.bf16.mxu1 %v869_v23 }
  0x76   :  { %688 = vmatpush3.bf16.msra.mxu1 %v741_v58 }
 0x126   :  { %v167_v40 = vpop.f32.mrb[0].mxu0 }
 0x127   :  { %v168_v41 = vadd.f32 %v167_v40, %v100_v38  ;;  %v169_v42 = vpop.f32.mrb[1].mxu0 }
 0x128   :  { %v170_v43 = vadd.f32 %v169_v42, %v104_v39  ;;  %v171_v44 = vpop.f32.mrb[2].mxu0 }
 0x129   :  { %vm174_vm3 = vcmp.gt.f32.partialorder %v168_v41, 0.0  ;;  %v176_v45 = vmul.f32 0.01, %v168_v41  ;;  %v172_v46 = vpop.f32.mrb[3].mxu0 }
 0x12a   :  { %vm175_vm4 = vcmp.gt.f32.partialorder %v170_v43, 0.0  ;;  %v177_v47 = vmul.f32 0.01, %v170_v43 }
 0x12b   :  { %v178_v48 = vsel %vm174_vm3, %v168_v41, %v176_v45  ;;  %v263_v52 = vpop.f32.mrb[0].mxu1 }
 0x12c   :  { %v179_v49 = vsel %vm175_vm4, %v170_v43, %v177_v47  ;;  %v180_v51 = vpack.c.bf16 %v178_v48, %v178_v48  ;;  %v671_v54 = vpop.f32.mrb[1].mxu1 }
 0x12d   :  { %v181_v50 = vpack.c.bf16 %v179_v49, %v179_v49  ;;  %v266_v55 = vpop.f32.mrb[2].mxu1 }
 0x12e   :  { %v672_v56 = vpop.f32.mrb[3].mxu1 }
 0x12f   :  { %397 = vmatprep.mubr.bf16.mxu0 %v181_v50 }
 0x130   :  { %398 = vmatmul.mubr.bf16.vlgmr.msra.gmra.mrb[4].mxu0 %v180_v51 }
 0x131   :  { %695 = vmatprep.mubr.msk.bf16.mxu0 %vm870_vm2, %v869_v23 }
 0x203   :  { %v648_v59 = vpop.f32.mrb[4].mxu0 }
 0x204   :  { %v649_v60 = vpop.f32.mrb[5].mxu0 }
 0x205   :  { %v650_v61 = vadd.f32 %v649_v60, %v648_v59  ;;  %v651_v62 = vpop.f32.mrb[6].mxu0 }
 0x206   :  { %v652_v0 = vpop.f32.mrb[7].mxu0 }
 0x207   :  { %v400_v1 = vadd.f32 %v650_v61, %v263_v52 }
 0x209   :  { %v412_v2 = vadd.f32 %v619_v63, %v400_v1 }
 0x20b   :  { %vm413_vm5 = vcmp.gt.f32.partialorder %v412_v2, 0.0  ;;  %v414_v3 = vmul.f32 0.01, %v412_v2 }
 0x20d   :  { %v415_v4 = vsel %vm413_vm5, %v412_v2, %v414_v3 }
 0x20e   :  { %v416_v5 = vpack.c.bf16 %v415_v4, %v415_v4 }
 0x210   :  { %690 = vmatmul.mubr.bf16.vlgmr.msra.gmra.mrb[4].mxu1 %v416_v5 }
 0x2e3   :  { %v522_v7 = vpop.f32.mrb[4].mxu1 }
 0x2e4   :  { %v523_v8 = vadd.f32 %v620_v6, %v522_v7  ;;  %v691_v9 = vpop.f32.mrb[5].mxu1 }
 0x2e5   :  { %v525_v10 = vpop.f32.mrb[6].mxu1 }
 0x2e6   :  { %vm528_vm6 = vcmp.gt.f32.partialorder %v523_v8, 0.0  ;;  %v529_v11 = vmul.f32 0.01, %v523_v8  ;;  %v692_v12 = vpop.f32.mrb[7].mxu1 }
 0x2e8   :  { %v530_v13 = vsel %vm528_vm6, %v523_v8, %v529_v11 }
 0x2e9   :  { %v532_v14 = vpack.c.bf16 %v530_v13, %v530_v13 }
 0x2eb   :  { %694 = vmatpush3.bf16.xpose.msra.mxu0 %v532_v14 }
 0x2f2   :  { %696 = vmatmul.mubr.bf16.vlgmr.msra.gmra.mrb[8].mxu0 %v531_v15 }
 0x3c5   :  { %v569_v17 = vpop.f32.mrb[8].mxu0 }
 0x3c6   :  { %v570_v18 = vadd.f32 %v569_v17, %v534_v16  ;;  %v697_v19 = vpop.f32.mrb[9].mxu0 }
 0x3c7   :  { %v572_v20 = vpop.f32.mrb[10].mxu0 }
 0x3c8   :  { %v698_v21 = vpop.f32.mrb[11].mxu0  ;;  %576 = vst.msk [vmem:[#allocation11] sm:$0x1] %vm575_vm7, %v570_v18 }
 0x3c9   :  { %841 = shalt.err (!%p838_p8)
}
 0x3ca   :  { %s842_s15 = scalar_lea.hbm %s1040_s10, 16 }
 0x3cb   :  { %p843_p9 = scmp.ne.s32.totalorder %s1040_s10, %s842_s15  ;;  %p846_p10 = scmp.lt.u32.totalorder %s842_s15, %s1040_s10 }
 0x3cd   :  { %p848_p11 = pnand %p846_p10, %p843_p9 }
 0x3cf   :  { %851 = shalt.err (!%p848_p11)
}
 0x3d0   :  { %586 = dma.vmem_to_hbm [thread:$0]  %s584_s11, 16, %s1040_s10, [#allocation5]  }
 0x3d1   :  { %858 = dma.done.wait [#allocation5], 16  }
 0x3d2   :  { %859 = vsyncadd [#allocation5], 4294967280 }
 0x3d3   :  { %590 = vsyncpa [#allocation4], 1 }
 0x3d4   :  { %591 = vsyncpa [#allocation7], 1 }
 0x3d5   :  { %592 = vsyncpa [#allocation10], 1 }
 0x3d6   :  { %593 = vsyncpa [#allocation5], 1 }

</bundles_post_ra>
